<compile_context>
chip_gen: v5e
topology: v5e:2x2
jax: 0.10.0
libtpu: 0.0.40
codegen_flags: <defaults>
</compile_context>

<pallas_src>
import functools
import math

import jax
import jax.numpy as jnp
from jax import lax
from jax.experimental import pallas as pl
from jax.experimental.pallas import tpu as pltpu


# ----------------------------------------------------------------------------
# Helpers
# ----------------------------------------------------------------------------
def _round_up(x, m):
    return ((x + m - 1) // m) * m


def _pick_tile(dim, target, align):
    """Full dim if it fits, else the largest divisor <= target that is a
    multiple of `align`; else fall back to the full dim (always legal)."""
    if dim <= target:
        return dim
    for cand in range(min(target, dim), 0, -1):
        if dim % cand == 0 and cand % align == 0:
            return cand
    return dim


@functools.lru_cache(maxsize=1)
def _vmem_limit_bytes():
    """Per-generation VMEM request: leave headroom for Mosaic scratch.
    ~48 MiB on v7x (64 MiB physical), 64 MiB on v5e/v6e (128 MiB physical)."""
    try:
        cap = int(pltpu.get_tpu_info().vmem_capacity_bytes)
        return min(64 * 1024 * 1024, (cap * 3) // 4)
    except Exception:  # pragma: no cover - interpret mode / unknown backend
        return 48 * 1024 * 1024


# ----------------------------------------------------------------------------
# Weight-resident linear:  o = x @ w^T + b   (w is (out_features, in_features))
# ----------------------------------------------------------------------------
def _linear_kernel(x_ref, w_ref, b_ref, o_ref):
    # x: (tm, K), w: (tn, K) -> contract the last dims (no transpose).
    acc = lax.dot_general(
        x_ref[...], w_ref[...],
        dimension_numbers=(((1,), (1,)), ((), ())),
        preferred_element_type=jnp.float32)
    o_ref[...] = (acc + b_ref[...].astype(jnp.float32)).astype(o_ref.dtype)


def linear_pallas(x, w, b, *, compute_dtype=jnp.bfloat16, out_dtype=None,
                  tm_target=512, tn_target=512):
    """x: (M, K), w: (N, K) [PyTorch layout], b: (N,) -> (M, N)."""
    M, K = x.shape
    Nout, K2 = w.shape
    assert K == K2
    out_dtype = out_dtype if out_dtype is not None else compute_dtype

    xc = x.astype(compute_dtype)
    wc = w.astype(compute_dtype)
    b2 = b.astype(jnp.float32).reshape(1, Nout)

    # Pad the row dim so an 8-aligned tile divides it exactly.
    tm = min(tm_target, _round_up(M, 8))
    Mpad = _round_up(M, tm)
    if Mpad != M:
        xc = jnp.pad(xc, ((0, Mpad - M), (0, 0)))
    tn = _pick_tile(Nout, tn_target, 128)

    itemsize = jnp.dtype(compute_dtype).itemsize
    flops = 2 * Mpad * Nout * K
    bytes_accessed = int((Mpad * K + Nout * K + Mpad * Nout) * itemsize
                         + b2.size * 4)

    out = pl.pallas_call(
        _linear_kernel,
        out_shape=jax.ShapeDtypeStruct((Mpad, Nout), out_dtype),
        grid_spec=pltpu.PrefetchScalarGridSpec(
            num_scalar_prefetch=0,
            # N-tiles outer, M-tiles inner: weight block index depends only on
            # j -> weight stays VMEM-resident across all M tiles.
            grid=(Nout // tn, Mpad // tm),
            in_specs=[
                pl.BlockSpec((tm, K), lambda j, i: (i, 0)),
                pl.BlockSpec((tn, K), lambda j, i: (j, 0)),
                pl.BlockSpec((1, tn), lambda j, i: (0, j)),
            ],
            out_specs=pl.BlockSpec((tm, tn), lambda j, i: (i, j)),
        ),
        compiler_params=pltpu.CompilerParams(
            dimension_semantics=("parallel", "parallel"),
            vmem_limit_bytes=_vmem_limit_bytes(),
        ),
        cost_estimate=pl.CostEstimate(
            flops=flops, transcendentals=0, bytes_accessed=bytes_accessed),
    )(xc, wc, b2)
    return out[:M] if Mpad != M else out


# ----------------------------------------------------------------------------
# Flash-style multi-head attention core (online softmax over kv tiles).
# q is pre-scaled by 1/sqrt(D) (folded into the q projection weights).
# ----------------------------------------------------------------------------
def _flash_mha_kernel(q_ref, k_ref, v_ref, o_ref, m_ref, l_ref, acc_ref,
                      *, num_heads):
    ki = pl.program_id(2)

    @pl.when(ki == 0)
    def _():
        m_ref[...] = jnp.full_like(m_ref, -jnp.inf)
        l_ref[...] = jnp.zeros_like(l_ref)
        acc_ref[...] = jnp.zeros_like(acc_ref)

    q = q_ref[0]                          # (tq, E)
    k = k_ref[0]                          # (tkv, E)
    v = v_ref[0]                          # (tkv, E)
    E = q.shape[-1]
    H = num_heads
    D = E // H

    for h in range(H):                    # static unroll; state stays narrow
        cs = slice(h * D, (h + 1) * D)
        # scores = q_h @ k_h^T without building an explicit transpose.
        s = lax.dot_general(q[:, cs], k[:, cs],
                            dimension_numbers=(((1,), (1,)), ((), ())),
                            preferred_element_type=jnp.float32)     # (tq,tkv)
        m_old = m_ref[:, h:h + 1]                                    # (tq,1)
        m_new = jnp.maximum(m_old, jnp.max(s, axis=-1, keepdims=True))
        alpha = jnp.exp(m_old - m_new)
        # TODO(synk): bf16 exp here on v6e/v7x if the EUP slot is binding.
        p = jnp.exp(s - m_new)
        l_ref[:, h:h + 1] = alpha * l_ref[:, h:h + 1] + jnp.sum(
            p, axis=-1, keepdims=True)
        pv = lax.dot_general(p.astype(v.dtype), v[:, cs],
                             dimension_numbers=(((1,), (0,)), ((), ())),
                             preferred_element_type=jnp.float32)     # (tq,D)
        # Direct per-head accumulation into the output slab columns.
        acc_ref[:, cs] = alpha * acc_ref[:, cs] + pv
        m_ref[:, h:h + 1] = m_new

    @pl.when(ki == pl.num_programs(2) - 1)
    def _():
        for h in range(H):
            cs = slice(h * D, (h + 1) * D)
            inv_l = pl.reciprocal(l_ref[:, h:h + 1], approx=True)   # EUP slot
            acc_ref[:, cs] = acc_ref[:, cs] * inv_l
        o_ref[0] = acc_ref[...].astype(o_ref.dtype)   # single lane-dense store


def flash_mha_pallas(q, k, v, *, num_heads, tq_target=256, tkv_target=512):
    """q, k, v: (N, L, E), q pre-scaled by 1/sqrt(D). Returns (N, L, E)."""
    N, L, E = q.shape
    H = num_heads
    tq = _pick_tile(L, tq_target, 8)
    tkv = _pick_tile(L, tkv_target, 8)

    itemsize = jnp.dtype(q.dtype).itemsize
    flops = 4 * N * L * L * E                     # QK^T + PV
    transcendentals = N * H * L * L               # softmax exp
    bytes_accessed = int(4 * N * L * E * itemsize)

    kernel = functools.partial(_flash_mha_kernel, num_heads=H)
    q_spec = pl.BlockSpec((1, tq, E), lambda n, qi, ki: (n, qi, 0))
    kv_spec = pl.BlockSpec((1, tkv, E), lambda n, qi, ki: (n, ki, 0))
    return pl.pallas_call(
        kernel,
        out_shape=jax.ShapeDtypeStruct((N, L, E), q.dtype),
        grid_spec=pltpu.PrefetchScalarGridSpec(
            num_scalar_prefetch=0,
            grid=(N, L // tq, L // tkv),
            in_specs=[q_spec, kv_spec, kv_spec],
            out_specs=pl.BlockSpec((1, tq, E), lambda n, qi, ki: (n, qi, 0)),
            scratch_shapes=[
                pltpu.VMEM((tq, H), jnp.float32),   # running max per head
                pltpu.VMEM((tq, H), jnp.float32),   # running denom per head
                pltpu.VMEM((tq, E), jnp.float32),   # f32 output accumulator
            ],
        ),
        compiler_params=pltpu.CompilerParams(
            dimension_semantics=("parallel", "parallel", "arbitrary"),
            vmem_limit_bytes=_vmem_limit_bytes(),
        ),
        cost_estimate=pl.CostEstimate(
            flops=flops, transcendentals=transcendentals,
            bytes_accessed=bytes_accessed),
    )(q, k, v)


# ----------------------------------------------------------------------------
# MultiSelfAttention forward (nn.MultiheadAttention(x, x, x), no mask/dropout)
# ----------------------------------------------------------------------------
def multi_self_attention(x, params, num_heads, *, compute_dtype=jnp.bfloat16):
    """x: (L, N, E). Returns (L, N, E)."""
    L, N, E = x.shape
    H = num_heads
    assert E % H == 0
    scale = 1.0 / math.sqrt(E // H)

    w_in = params["in_proj_weight"]    # (3E, E)  (out, in) - PyTorch layout
    b_in = params["in_proj_bias"]      # (3E,)
    w_out = params["out_proj_weight"]  # (E, E)
    b_out = params["out_proj_bias"]    # (E,)

    # Fold the 1/sqrt(D) softmax scale into the q projection (free under jit).
    w_q, w_k, w_v = w_in[:E] * scale, w_in[E:2 * E], w_in[2 * E:]
    b_q, b_k, b_v = b_in[:E] * scale, b_in[E:2 * E], b_in[2 * E:]

    # Batch-major so attention blocks are lane-dense (1, tile, E).
    # TODO(synk): fold this transpose (and the inverse below) into the
    # projection out_specs instead of standalone HBM passes.
    xt = jnp.transpose(x, (1, 0, 2)).reshape(N * L, E)

    lin = functools.partial(linear_pallas, compute_dtype=compute_dtype)
    q = lin(xt, w_q, b_q).reshape(N, L, E)
    k = lin(xt, w_k, b_k).reshape(N, L, E)
    v = lin(xt, w_v, b_v).reshape(N, L, E)

    attn = flash_mha_pallas(q, k, v, num_heads=H)                 # (N, L, E)

    out = lin(attn.reshape(N * L, E), w_out, b_out, out_dtype=x.dtype)
    return jnp.transpose(out.reshape(N, L, E), (1, 0, 2))         # (L, N, E)


# ----------------------------------------------------------------------------
# Params + pure-JAX reference (correctness check)
# ----------------------------------------------------------------------------
def init_params(key, embed_dim):
    E = embed_dim
    k1, k2, k3, k4 = jax.random.split(key, 4)
    limit = (6.0 / (E + E)) ** 0.5
    return {
        "in_proj_weight": jax.random.uniform(k1, (3 * E, E), jnp.float32,
                                             -limit, limit),
        "in_proj_bias": jax.random.uniform(k3, (3 * E,), jnp.float32,
                                           -0.1, 0.1),
        "out_proj_weight": jax.random.uniform(k2, (E, E), jnp.float32,
                                              -limit, limit),
        "out_proj_bias": jax.random.uniform(k4, (E,), jnp.float32,
                                            -0.1, 0.1),
    }


def _reference(x, params, num_heads):
    L, N, E = x.shape
    H = num_heads
    D = E // H
    qkv = x @ params["in_proj_weight"].T + params["in_proj_bias"]  # (L, N, 3E)
    q, k, v = jnp.split(qkv, 3, axis=-1)

    def heads(t):
        return t.reshape(L, N, H, D).transpose(1, 2, 0, 3)          # (N,H,L,D)

    qh, kh, vh = heads(q), heads(k), heads(v)
    s = jnp.einsum("nhqd,nhkd->nhqk", qh, kh) / (D ** 0.5)
    p = jax.nn.softmax(s, axis=-1)
    o = jnp.einsum("nhqk,nhkd->nhqd", p, vh)
    o = o.transpose(2, 0, 1, 3).reshape(L, N, E)
    return o @ params["out_proj_weight"].T + params["out_proj_bias"]


if __name__ == "__main__":
    L, N, E, H = 8, 2, 32, 4   # seq_len, batch, embed_dim, num_heads

    key = jax.random.PRNGKey(0)
    kx, kp = jax.random.split(key)
    x = jax.random.normal(kx, (L, N, E), dtype=jnp.float32)
    params = init_params(kp, E)
    ref = _reference(x, params, H)

    # f32 path: tight correctness check against the pure-JAX reference.
    fwd_f32 = jax.jit(functools.partial(
        multi_self_attention, num_heads=H, compute_dtype=jnp.float32))
    out_f32 = jax.block_until_ready(fwd_f32(x, params))
    assert out_f32.shape == (L, N, E)
    assert jnp.all(jnp.isfinite(out_f32))
    err32 = float(jnp.max(jnp.abs(out_f32 - ref)))
    assert err32 < 1e-2, f"f32 mismatch vs reference: {err32}"

    # bf16 fast path (MXU-native operands, f32 accumulation) — looser bound.
    fwd_bf16 = jax.jit(functools.partial(
        multi_self_attention, num_heads=H, compute_dtype=jnp.bfloat16))
    out_bf16 = jax.block_until_ready(fwd_bf16(x, params))
    assert out_bf16.shape == (L, N, E)
    assert jnp.all(jnp.isfinite(out_bf16))
    err16 = float(jnp.max(jnp.abs(out_bf16 - ref)))
    assert err16 < 2e-1, f"bf16 mismatch vs reference: {err16}"

    print("KERNEL_OK")
</pallas_src>

<mosaic_0001>
module attributes {stable_mosaic.version = 11 : i64} {
  func.func @_flash_mha_kernel(%arg0: i32, %arg1: i32, %arg2: i32, %arg3: memref<1x8x32xf32, #tpu.memory_space<vmem>>, %arg4: memref<1x8x32xf32, #tpu.memory_space<vmem>>, %arg5: memref<1x8x32xf32, #tpu.memory_space<vmem>>, %arg6: memref<1x8x32xf32, #tpu.memory_space<vmem>>, %arg7: memref<8x4xf32, #tpu.memory_space<vmem>>, %arg8: memref<8x4xf32, #tpu.memory_space<vmem>>, %arg9: memref<8x32xf32, #tpu.memory_space<vmem>>) attributes {dimension_semantics = [#tpu.dimension_semantics<parallel>, #tpu.dimension_semantics<parallel>, #tpu.dimension_semantics<arbitrary>], iteration_bounds = array<i64: 2, 1, 1>, scalar_prefetch = 0 : i64, scratch_operands = 3 : i64, tpu.core_type = #tpu.core_type<tc>, window_params = [{transform_indices = @transform_0, window_bounds = array<i64: 1, 8, 32>}, {transform_indices = @transform_1, window_bounds = array<i64: 1, 8, 32>}, {transform_indices = @transform_2, window_bounds = array<i64: 1, 8, 32>}, {transform_indices = @transform_3, window_bounds = array<i64: 1, 8, 32>}]} {
    %c0_i32 = arith.constant 0 : i32
    %0 = arith.cmpi eq, %arg2, %c0_i32 : i32
    %1 = arith.extui %0 : i1 to i32
    %c0_i32_0 = arith.constant 0 : i32
    %2 = arith.cmpi ne, %1, %c0_i32_0 : i32
    scf.if %2 {
      %cst_68 = arith.constant 0xFF800000 : f32
      %116 = vector.broadcast %cst_68 : f32 to vector<8x4xf32>
      %c0_69 = arith.constant 0 : index
      %c0_70 = arith.constant 0 : index
      %117 = vector.load %arg7[%c0_69, %c0_70] : memref<8x4xf32, #tpu.memory_space<vmem>>, vector<8x4xf32>
      tpu.vector_store %arg7[%c0_69, %c0_70], %116 {strides = array<i32>} : memref<8x4xf32, #tpu.memory_space<vmem>>, vector<8x4xf32>,
      %cst_71 = arith.constant 0.000000e+00 : f32
      %118 = vector.broadcast %cst_71 : f32 to vector<8x4xf32>
      %c0_72 = arith.constant 0 : index
      %c0_73 = arith.constant 0 : index
      %119 = vector.load %arg8[%c0_72, %c0_73] : memref<8x4xf32, #tpu.memory_space<vmem>>, vector<8x4xf32>
      tpu.vector_store %arg8[%c0_72, %c0_73], %118 {strides = array<i32>} : memref<8x4xf32, #tpu.memory_space<vmem>>, vector<8x4xf32>,
      %cst_74 = arith.constant 0.000000e+00 : f32
      %120 = vector.broadcast %cst_74 : f32 to vector<8x32xf32>
      %c0_75 = arith.constant 0 : index
      %c0_76 = arith.constant 0 : index
      %121 = vector.load %arg9[%c0_75, %c0_76] : memref<8x32xf32, #tpu.memory_space<vmem>>, vector<8x32xf32>
      tpu.vector_store %arg9[%c0_75, %c0_76], %120 {strides = array<i32>} : memref<8x32xf32, #tpu.memory_space<vmem>>, vector<8x32xf32>,
    } else {
    }
    %c0 = arith.constant 0 : index
    %c0_1 = arith.constant 0 : index
    %c0_2 = arith.constant 0 : index
    %3 = vector.load %arg3[%c0, %c0_1, %c0_2] : memref<1x8x32xf32, #tpu.memory_space<vmem>>, vector<1x8x32xf32>
    %4 = vector.shape_cast %3 : vector<1x8x32xf32> to vector<8x32xf32>
    %c0_3 = arith.constant 0 : index
    %c0_4 = arith.constant 0 : index
    %c0_5 = arith.constant 0 : index
    %5 = vector.load %arg4[%c0_3, %c0_4, %c0_5] : memref<1x8x32xf32, #tpu.memory_space<vmem>>, vector<1x8x32xf32>
    %6 = vector.shape_cast %5 : vector<1x8x32xf32> to vector<8x32xf32>
    %c0_6 = arith.constant 0 : index
    %c0_7 = arith.constant 0 : index
    %c0_8 = arith.constant 0 : index
    %7 = vector.load %arg5[%c0_6, %c0_7, %c0_8] : memref<1x8x32xf32, #tpu.memory_space<vmem>>, vector<1x8x32xf32>
    %8 = vector.shape_cast %7 : vector<1x8x32xf32> to vector<8x32xf32>
    %9 = vector.extract_strided_slice %4 {offsets = [0, 0], sizes = [8, 8], strides = [1, 1]} : vector<8x32xf32> to vector<8x8xf32>
    %10 = vector.extract_strided_slice %6 {offsets = [0, 0], sizes = [8, 8], strides = [1, 1]} : vector<8x32xf32> to vector<8x8xf32>
    %cst = arith.constant dense<0.000000e+00> : vector<8x8xf32>
    %11 = tpu.matmul %9, %10, %cst {dimension_numbers = #tpu.dot_dimension_numbers<[1], [1], [0], [0], [0, 0, 1, 0], [], []>} : vector<8x8xf32>, vector<8x8xf32>, vector<8x8xf32> -> vector<8x8xf32>
    %c0_9 = arith.constant 0 : index
    %c0_10 = arith.constant 0 : index
    %12 = vector.load %arg7[%c0_9, %c0_10] : memref<8x4xf32, #tpu.memory_space<vmem>>, vector<8x1xf32>
    %cst_11 = arith.constant dense<0xFF800000> : vector<8xf32>
    %13 = vector.multi_reduction <maximumf>, %11, %cst_11 [1] : vector<8x8xf32> to vector<8xf32>
    %14 = vector.shape_cast %13 : vector<8xf32> to vector<8x1xf32>
    %15 = arith.maximumf %12, %14 : vector<8x1xf32>
    %16 = arith.subf %12, %15 : vector<8x1xf32>
    %17 = math.exp %16 : vector<8x1xf32>
    %18 = vector.broadcast %15 : vector<8x1xf32> to vector<8x8xf32>
    %19 = arith.subf %11, %18 : vector<8x8xf32>
    %20 = math.exp %19 : vector<8x8xf32>
    %c0_12 = arith.constant 0 : index
    %c0_13 = arith.constant 0 : index
    %21 = vector.load %arg8[%c0_12, %c0_13] : memref<8x4xf32, #tpu.memory_space<vmem>>, vector<8x1xf32>
    %22 = arith.mulf %17, %21 : vector<8x1xf32>
    %cst_14 = arith.constant dense<0.000000e+00> : vector<8xf32>
    %23 = vector.multi_reduction <add>, %20, %cst_14 [1] : vector<8x8xf32> to vector<8xf32>
    %24 = vector.shape_cast %23 : vector<8xf32> to vector<8x1xf32>
    %25 = arith.addf %22, %24 : vector<8x1xf32>
    %c0_15 = arith.constant 0 : index
    %c0_16 = arith.constant 0 : index
    %26 = vector.load %arg8[%c0_15, %c0_16] : memref<8x4xf32, #tpu.memory_space<vmem>>, vector<8x1xf32>
    tpu.vector_store %arg8[%c0_15, %c0_16], %25 {strides = array<i32>} : memref<8x4xf32, #tpu.memory_space<vmem>>, vector<8x1xf32>,
    %27 = vector.extract_strided_slice %8 {offsets = [0, 0], sizes = [8, 8], strides = [1, 1]} : vector<8x32xf32> to vector<8x8xf32>
    %cst_17 = arith.constant dense<0.000000e+00> : vector<8x8xf32>
    %28 = tpu.matmul %20, %27, %cst_17 {dimension_numbers = #tpu.dot_dimension_numbers<[1], [0], [0], [1], [0, 0, 1, 1], [], []>} : vector<8x8xf32>, vector<8x8xf32>, vector<8x8xf32> -> vector<8x8xf32>
    %c0_18 = arith.constant 0 : index
    %c0_19 = arith.constant 0 : index
    %29 = vector.load %arg9[%c0_18, %c0_19] : memref<8x32xf32, #tpu.memory_space<vmem>>, vector<8x8xf32>
    %30 = vector.broadcast %17 : vector<8x1xf32> to vector<8x8xf32>
    %31 = arith.mulf %30, %29 : vector<8x8xf32>
    %32 = arith.addf %31, %28 : vector<8x8xf32>
    %c0_20 = arith.constant 0 : index
    %c0_21 = arith.constant 0 : index
    %33 = vector.load %arg9[%c0_20, %c0_21] : memref<8x32xf32, #tpu.memory_space<vmem>>, vector<8x8xf32>
    tpu.vector_store %arg9[%c0_20, %c0_21], %32 {strides = array<i32>} : memref<8x32xf32, #tpu.memory_space<vmem>>, vector<8x8xf32>,
    %c0_22 = arith.constant 0 : index
    %c0_23 = arith.constant 0 : index
    %34 = vector.load %arg7[%c0_22, %c0_23] : memref<8x4xf32, #tpu.memory_space<vmem>>, vector<8x1xf32>
    tpu.vector_store %arg7[%c0_22, %c0_23], %15 {strides = array<i32>} : memref<8x4xf32, #tpu.memory_space<vmem>>, vector<8x1xf32>,
    %35 = vector.extract_strided_slice %4 {offsets = [0, 8], sizes = [8, 8], strides = [1, 1]} : vector<8x32xf32> to vector<8x8xf32>
    %36 = vector.extract_strided_slice %6 {offsets = [0, 8], sizes = [8, 8], strides = [1, 1]} : vector<8x32xf32> to vector<8x8xf32>
    %cst_24 = arith.constant dense<0.000000e+00> : vector<8x8xf32>
    %37 = tpu.matmul %35, %36, %cst_24 {dimension_numbers = #tpu.dot_dimension_numbers<[1], [1], [0], [0], [0, 0, 1, 0], [], []>} : vector<8x8xf32>, vector<8x8xf32>, vector<8x8xf32> -> vector<8x8xf32>
    %c0_25 = arith.constant 0 : index
    %c1 = arith.constant 1 : index
    %38 = vector.load %arg7[%c0_25, %c1] : memref<8x4xf32, #tpu.memory_space<vmem>>, vector<8x1xf32>
    %cst_26 = arith.constant dense<0xFF800000> : vector<8xf32>
    %39 = vector.multi_reduction <maximumf>, %37, %cst_26 [1] : vector<8x8xf32> to vector<8xf32>
    %40 = vector.shape_cast %39 : vector<8xf32> to vector<8x1xf32>
    %41 = arith.maximumf %38, %40 : vector<8x1xf32>
    %42 = arith.subf %38, %41 : vector<8x1xf32>
    %43 = math.exp %42 : vector<8x1xf32>
    %44 = vector.broadcast %41 : vector<8x1xf32> to vector<8x8xf32>
    %45 = arith.subf %37, %44 : vector<8x8xf32>
    %46 = math.exp %45 : vector<8x8xf32>
    %c0_27 = arith.constant 0 : index
    %c1_28 = arith.constant 1 : index
    %47 = vector.load %arg8[%c0_27, %c1_28] : memref<8x4xf32, #tpu.memory_space<vmem>>, vector<8x1xf32>
    %48 = arith.mulf %43, %47 : vector<8x1xf32>
    %cst_29 = arith.constant dense<0.000000e+00> : vector<8xf32>
    %49 = vector.multi_reduction <add>, %46, %cst_29 [1] : vector<8x8xf32> to vector<8xf32>
    %50 = vector.shape_cast %49 : vector<8xf32> to vector<8x1xf32>
    %51 = arith.addf %48, %50 : vector<8x1xf32>
    %c0_30 = arith.constant 0 : index
    %c1_31 = arith.constant 1 : index
    %52 = vector.load %arg8[%c0_30, %c1_31] : memref<8x4xf32, #tpu.memory_space<vmem>>, vector<8x1xf32>
    tpu.vector_store %arg8[%c0_30, %c1_31], %51 {strides = array<i32>} : memref<8x4xf32, #tpu.memory_space<vmem>>, vector<8x1xf32>,
    %53 = vector.extract_strided_slice %8 {offsets = [0, 8], sizes = [8, 8], strides = [1, 1]} : vector<8x32xf32> to vector<8x8xf32>
    %cst_32 = arith.constant dense<0.000000e+00> : vector<8x8xf32>
    %54 = tpu.matmul %46, %53, %cst_32 {dimension_numbers = #tpu.dot_dimension_numbers<[1], [0], [0], [1], [0, 0, 1, 1], [], []>} : vector<8x8xf32>, vector<8x8xf32>, vector<8x8xf32> -> vector<8x8xf32>
    %c0_33 = arith.constant 0 : index
    %c8 = arith.constant 8 : index
    %55 = vector.load %arg9[%c0_33, %c8] : memref<8x32xf32, #tpu.memory_space<vmem>>, vector<8x8xf32>
    %56 = vector.broadcast %43 : vector<8x1xf32> to vector<8x8xf32>
    %57 = arith.mulf %56, %55 : vector<8x8xf32>
    %58 = arith.addf %57, %54 : vector<8x8xf32>
    %c0_34 = arith.constant 0 : index
    %c8_35 = arith.constant 8 : index
    %59 = vector.load %arg9[%c0_34, %c8_35] : memref<8x32xf32, #tpu.memory_space<vmem>>, vector<8x8xf32>
    tpu.vector_store %arg9[%c0_34, %c8_35], %58 {strides = array<i32>} : memref<8x32xf32, #tpu.memory_space<vmem>>, vector<8x8xf32>,
    %c0_36 = arith.constant 0 : index
    %c1_37 = arith.constant 1 : index
    %60 = vector.load %arg7[%c0_36, %c1_37] : memref<8x4xf32, #tpu.memory_space<vmem>>, vector<8x1xf32>
    tpu.vector_store %arg7[%c0_36, %c1_37], %41 {strides = array<i32>} : memref<8x4xf32, #tpu.memory_space<vmem>>, vector<8x1xf32>,
    %61 = vector.extract_strided_slice %4 {offsets = [0, 16], sizes = [8, 8], strides = [1, 1]} : vector<8x32xf32> to vector<8x8xf32>
    %62 = vector.extract_strided_slice %6 {offsets = [0, 16], sizes = [8, 8], strides = [1, 1]} : vector<8x32xf32> to vector<8x8xf32>
    %cst_38 = arith.constant dense<0.000000e+00> : vector<8x8xf32>
    %63 = tpu.matmul %61, %62, %cst_38 {dimension_numbers = #tpu.dot_dimension_numbers<[1], [1], [0], [0], [0, 0, 1, 0], [], []>} : vector<8x8xf32>, vector<8x8xf32>, vector<8x8xf32> -> vector<8x8xf32>
    %c0_39 = arith.constant 0 : index
    %c2 = arith.constant 2 : index
    %64 = vector.load %arg7[%c0_39, %c2] : memref<8x4xf32, #tpu.memory_space<vmem>>, vector<8x1xf32>
    %cst_40 = arith.constant dense<0xFF800000> : vector<8xf32>
    %65 = vector.multi_reduction <maximumf>, %63, %cst_40 [1] : vector<8x8xf32> to vector<8xf32>
    %66 = vector.shape_cast %65 : vector<8xf32> to vector<8x1xf32>
    %67 = arith.maximumf %64, %66 : vector<8x1xf32>
    %68 = arith.subf %64, %67 : vector<8x1xf32>
    %69 = math.exp %68 : vector<8x1xf32>
    %70 = vector.broadcast %67 : vector<8x1xf32> to vector<8x8xf32>
    %71 = arith.subf %63, %70 : vector<8x8xf32>
    %72 = math.exp %71 : vector<8x8xf32>
    %c0_41 = arith.constant 0 : index
    %c2_42 = arith.constant 2 : index
    %73 = vector.load %arg8[%c0_41, %c2_42] : memref<8x4xf32, #tpu.memory_space<vmem>>, vector<8x1xf32>
    %74 = arith.mulf %69, %73 : vector<8x1xf32>
    %cst_43 = arith.constant dense<0.000000e+00> : vector<8xf32>
    %75 = vector.multi_reduction <add>, %72, %cst_43 [1] : vector<8x8xf32> to vector<8xf32>
    %76 = vector.shape_cast %75 : vector<8xf32> to vector<8x1xf32>
    %77 = arith.addf %74, %76 : vector<8x1xf32>
    %c0_44 = arith.constant 0 : index
    %c2_45 = arith.constant 2 : index
    %78 = vector.load %arg8[%c0_44, %c2_45] : memref<8x4xf32, #tpu.memory_space<vmem>>, vector<8x1xf32>
    tpu.vector_store %arg8[%c0_44, %c2_45], %77 {strides = array<i32>} : memref<8x4xf32, #tpu.memory_space<vmem>>, vector<8x1xf32>,
    %79 = vector.extract_strided_slice %8 {offsets = [0, 16], sizes = [8, 8], strides = [1, 1]} : vector<8x32xf32> to vector<8x8xf32>
    %cst_46 = arith.constant dense<0.000000e+00> : vector<8x8xf32>
    %80 = tpu.matmul %72, %79, %cst_46 {dimension_numbers = #tpu.dot_dimension_numbers<[1], [0], [0], [1], [0, 0, 1, 1], [], []>} : vector<8x8xf32>, vector<8x8xf32>, vector<8x8xf32> -> vector<8x8xf32>
    %c0_47 = arith.constant 0 : index
    %c16 = arith.constant 16 : index
    %81 = vector.load %arg9[%c0_47, %c16] : memref<8x32xf32, #tpu.memory_space<vmem>>, vector<8x8xf32>
    %82 = vector.broadcast %69 : vector<8x1xf32> to vector<8x8xf32>
    %83 = arith.mulf %82, %81 : vector<8x8xf32>
    %84 = arith.addf %83, %80 : vector<8x8xf32>
    %c0_48 = arith.constant 0 : index
    %c16_49 = arith.constant 16 : index
    %85 = vector.load %arg9[%c0_48, %c16_49] : memref<8x32xf32, #tpu.memory_space<vmem>>, vector<8x8xf32>
    tpu.vector_store %arg9[%c0_48, %c16_49], %84 {strides = array<i32>} : memref<8x32xf32, #tpu.memory_space<vmem>>, vector<8x8xf32>,
    %c0_50 = arith.constant 0 : index
    %c2_51 = arith.constant 2 : index
    %86 = vector.load %arg7[%c0_50, %c2_51] : memref<8x4xf32, #tpu.memory_space<vmem>>, vector<8x1xf32>
    tpu.vector_store %arg7[%c0_50, %c2_51], %67 {strides = array<i32>} : memref<8x4xf32, #tpu.memory_space<vmem>>, vector<8x1xf32>,
    %87 = vector.extract_strided_slice %4 {offsets = [0, 24], sizes = [8, 8], strides = [1, 1]} : vector<8x32xf32> to vector<8x8xf32>
    %88 = vector.extract_strided_slice %6 {offsets = [0, 24], sizes = [8, 8], strides = [1, 1]} : vector<8x32xf32> to vector<8x8xf32>
    %cst_52 = arith.constant dense<0.000000e+00> : vector<8x8xf32>
    %89 = tpu.matmul %87, %88, %cst_52 {dimension_numbers = #tpu.dot_dimension_numbers<[1], [1], [0], [0], [0, 0, 1, 0], [], []>} : vector<8x8xf32>, vector<8x8xf32>, vector<8x8xf32> -> vector<8x8xf32>
    %c0_53 = arith.constant 0 : index
    %c3 = arith.constant 3 : index
    %90 = vector.load %arg7[%c0_53, %c3] : memref<8x4xf32, #tpu.memory_space<vmem>>, vector<8x1xf32>
    %cst_54 = arith.constant dense<0xFF800000> : vector<8xf32>
    %91 = vector.multi_reduction <maximumf>, %89, %cst_54 [1] : vector<8x8xf32> to vector<8xf32>
    %92 = vector.shape_cast %91 : vector<8xf32> to vector<8x1xf32>
    %93 = arith.maximumf %90, %92 : vector<8x1xf32>
    %94 = arith.subf %90, %93 : vector<8x1xf32>
    %95 = math.exp %94 : vector<8x1xf32>
    %96 = vector.broadcast %93 : vector<8x1xf32> to vector<8x8xf32>
    %97 = arith.subf %89, %96 : vector<8x8xf32>
    %98 = math.exp %97 : vector<8x8xf32>
    %c0_55 = arith.constant 0 : index
    %c3_56 = arith.constant 3 : index
    %99 = vector.load %arg8[%c0_55, %c3_56] : memref<8x4xf32, #tpu.memory_space<vmem>>, vector<8x1xf32>
    %100 = arith.mulf %95, %99 : vector<8x1xf32>
    %cst_57 = arith.constant dense<0.000000e+00> : vector<8xf32>
    %101 = vector.multi_reduction <add>, %98, %cst_57 [1] : vector<8x8xf32> to vector<8xf32>
    %102 = vector.shape_cast %101 : vector<8xf32> to vector<8x1xf32>
    %103 = arith.addf %100, %102 : vector<8x1xf32>
    %c0_58 = arith.constant 0 : index
    %c3_59 = arith.constant 3 : index
    %104 = vector.load %arg8[%c0_58, %c3_59] : memref<8x4xf32, #tpu.memory_space<vmem>>, vector<8x1xf32>
    tpu.vector_store %arg8[%c0_58, %c3_59], %103 {strides = array<i32>} : memref<8x4xf32, #tpu.memory_space<vmem>>, vector<8x1xf32>,
    %105 = vector.extract_strided_slice %8 {offsets = [0, 24], sizes = [8, 8], strides = [1, 1]} : vector<8x32xf32> to vector<8x8xf32>
    %cst_60 = arith.constant dense<0.000000e+00> : vector<8x8xf32>
    %106 = tpu.matmul %98, %105, %cst_60 {dimension_numbers = #tpu.dot_dimension_numbers<[1], [0], [0], [1], [0, 0, 1, 1], [], []>} : vector<8x8xf32>, vector<8x8xf32>, vector<8x8xf32> -> vector<8x8xf32>
    %c0_61 = arith.constant 0 : index
    %c24 = arith.constant 24 : index
    %107 = vector.load %arg9[%c0_61, %c24] : memref<8x32xf32, #tpu.memory_space<vmem>>, vector<8x8xf32>
    %108 = vector.broadcast %95 : vector<8x1xf32> to vector<8x8xf32>
    %109 = arith.mulf %108, %107 : vector<8x8xf32>
    %110 = arith.addf %109, %106 : vector<8x8xf32>
    %c0_62 = arith.constant 0 : index
    %c24_63 = arith.constant 24 : index
    %111 = vector.load %arg9[%c0_62, %c24_63] : memref<8x32xf32, #tpu.memory_space<vmem>>, vector<8x8xf32>
    tpu.vector_store %arg9[%c0_62, %c24_63], %110 {strides = array<i32>} : memref<8x32xf32, #tpu.memory_space<vmem>>, vector<8x8xf32>,
    %c0_64 = arith.constant 0 : index
    %c3_65 = arith.constant 3 : index
    %112 = vector.load %arg7[%c0_64, %c3_65] : memref<8x4xf32, #tpu.memory_space<vmem>>, vector<8x1xf32>
    tpu.vector_store %arg7[%c0_64, %c3_65], %93 {strides = array<i32>} : memref<8x4xf32, #tpu.memory_space<vmem>>, vector<8x1xf32>,
    %c0_i32_66 = arith.constant 0 : i32
    %113 = arith.cmpi eq, %arg2, %c0_i32_66 : i32
    %114 = arith.extui %113 : i1 to i32
    %c0_i32_67 = arith.constant 0 : i32
    %115 = arith.cmpi ne, %114, %c0_i32_67 : i32
    scf.if %115 {
      %c0_68 = arith.constant 0 : index
      %c0_69 = arith.constant 0 : index
      %116 = vector.load %arg8[%c0_68, %c0_69] : memref<8x4xf32, #tpu.memory_space<vmem>>, vector<8x1xf32>
      %117 = tpu.reciprocal %116 {approx = true} : vector<8x1xf32> -> vector<8x1xf32>
      %c0_70 = arith.constant 0 : index
      %c0_71 = arith.constant 0 : index
      %118 = vector.load %arg9[%c0_70, %c0_71] : memref<8x32xf32, #tpu.memory_space<vmem>>, vector<8x8xf32>
      %119 = vector.broadcast %117 : vector<8x1xf32> to vector<8x8xf32>
      %120 = arith.mulf %118, %119 : vector<8x8xf32>
      %c0_72 = arith.constant 0 : index
      %c0_73 = arith.constant 0 : index
      %121 = vector.load %arg9[%c0_72, %c0_73] : memref<8x32xf32, #tpu.memory_space<vmem>>, vector<8x8xf32>
      tpu.vector_store %arg9[%c0_72, %c0_73], %120 {strides = array<i32>} : memref<8x32xf32, #tpu.memory_space<vmem>>, vector<8x8xf32>,
      %c0_74 = arith.constant 0 : index
      %c1_75 = arith.constant 1 : index
      %122 = vector.load %arg8[%c0_74, %c1_75] : memref<8x4xf32, #tpu.memory_space<vmem>>, vector<8x1xf32>
      %123 = tpu.reciprocal %122 {approx = true} : vector<8x1xf32> -> vector<8x1xf32>
      %c0_76 = arith.constant 0 : index
      %c8_77 = arith.constant 8 : index
      %124 = vector.load %arg9[%c0_76, %c8_77] : memref<8x32xf32, #tpu.memory_space<vmem>>, vector<8x8xf32>
      %125 = vector.broadcast %123 : vector<8x1xf32> to vector<8x8xf32>
      %126 = arith.mulf %124, %125 : vector<8x8xf32>
      %c0_78 = arith.constant 0 : index
      %c8_79 = arith.constant 8 : index
      %127 = vector.load %arg9[%c0_78, %c8_79] : memref<8x32xf32, #tpu.memory_space<vmem>>, vector<8x8xf32>
      tpu.vector_store %arg9[%c0_78, %c8_79], %126 {strides = array<i32>} : memref<8x32xf32, #tpu.memory_space<vmem>>, vector<8x8xf32>,
      %c0_80 = arith.constant 0 : index
      %c2_81 = arith.constant 2 : index
      %128 = vector.load %arg8[%c0_80, %c2_81] : memref<8x4xf32, #tpu.memory_space<vmem>>, vector<8x1xf32>
      %129 = tpu.reciprocal %128 {approx = true} : vector<8x1xf32> -> vector<8x1xf32>
      %c0_82 = arith.constant 0 : index
      %c16_83 = arith.constant 16 : index
      %130 = vector.load %arg9[%c0_82, %c16_83] : memref<8x32xf32, #tpu.memory_space<vmem>>, vector<8x8xf32>
      %131 = vector.broadcast %129 : vector<8x1xf32> to vector<8x8xf32>
      %132 = arith.mulf %130, %131 : vector<8x8xf32>
      %c0_84 = arith.constant 0 : index
      %c16_85 = arith.constant 16 : index
      %133 = vector.load %arg9[%c0_84, %c16_85] : memref<8x32xf32, #tpu.memory_space<vmem>>, vector<8x8xf32>
      tpu.vector_store %arg9[%c0_84, %c16_85], %132 {strides = array<i32>} : memref<8x32xf32, #tpu.memory_space<vmem>>, vector<8x8xf32>,
      %c0_86 = arith.constant 0 : index
      %c3_87 = arith.constant 3 : index
      %134 = vector.load %arg8[%c0_86, %c3_87] : memref<8x4xf32, #tpu.memory_space<vmem>>, vector<8x1xf32>
      %135 = tpu.reciprocal %134 {approx = true} : vector<8x1xf32> -> vector<8x1xf32>
      %c0_88 = arith.constant 0 : index
      %c24_89 = arith.constant 24 : index
      %136 = vector.load %arg9[%c0_88, %c24_89] : memref<8x32xf32, #tpu.memory_space<vmem>>, vector<8x8xf32>
      %137 = vector.broadcast %135 : vector<8x1xf32> to vector<8x8xf32>
      %138 = arith.mulf %136, %137 : vector<8x8xf32>
      %c0_90 = arith.constant 0 : index
      %c24_91 = arith.constant 24 : index
      %139 = vector.load %arg9[%c0_90, %c24_91] : memref<8x32xf32, #tpu.memory_space<vmem>>, vector<8x8xf32>
      tpu.vector_store %arg9[%c0_90, %c24_91], %138 {strides = array<i32>} : memref<8x32xf32, #tpu.memory_space<vmem>>, vector<8x8xf32>,
      %c0_92 = arith.constant 0 : index
      %c0_93 = arith.constant 0 : index
      %140 = vector.load %arg9[%c0_92, %c0_93] : memref<8x32xf32, #tpu.memory_space<vmem>>, vector<8x32xf32>
      %c0_94 = arith.constant 0 : index
      %c0_95 = arith.constant 0 : index
      %c0_96 = arith.constant 0 : index
      %141 = vector.load %arg6[%c0_94, %c0_95, %c0_96] : memref<1x8x32xf32, #tpu.memory_space<vmem>>, vector<1x8x32xf32>
      %142 = vector.shape_cast %141 : vector<1x8x32xf32> to vector<8x32xf32>
      %143 = vector.shape_cast %140 : vector<8x32xf32> to vector<1x8x32xf32>
      tpu.vector_store %arg6[%c0_94, %c0_95, %c0_96], %143 {strides = array<i32>} : memref<1x8x32xf32, #tpu.memory_space<vmem>>, vector<1x8x32xf32>,
    } else {
    }
    return
  }
  func.func @transform_0(%arg0: i32, %arg1: i32, %arg2: i32) -> (i32, i32, i32) {
    %c0_i32 = arith.constant 0 : i32
    %c0_i32_0 = arith.constant 0 : i32
    return %arg0, %arg1, %c0_i32 : i32, i32, i32
  }
  func.func @transform_1(%arg0: i32, %arg1: i32, %arg2: i32) -> (i32, i32, i32) {
    %c0_i32 = arith.constant 0 : i32
    %c0_i32_0 = arith.constant 0 : i32
    return %arg0, %arg2, %c0_i32 : i32, i32, i32
  }
  func.func @transform_2(%arg0: i32, %arg1: i32, %arg2: i32) -> (i32, i32, i32) {
    %c0_i32 = arith.constant 0 : i32
    %c0_i32_0 = arith.constant 0 : i32
    return %arg0, %arg2, %c0_i32 : i32, i32, i32
  }
  func.func @transform_3(%arg0: i32, %arg1: i32, %arg2: i32) -> (i32, i32, i32) {
    %c0_i32 = arith.constant 0 : i32
    %c0_i32_0 = arith.constant 0 : i32
    return %arg0, %arg1, %c0_i32 : i32, i32, i32
  }
}

module attributes {stable_mosaic.version = 11 : i64} {
  func.func @_linear_kernel(%arg0: i32, %arg1: i32, %arg2: memref<16x32xf32, #tpu.memory_space<vmem>>, %arg3: memref<32x32xf32, #tpu.memory_space<vmem>>, %arg4: memref<1x32xf32, #tpu.memory_space<vmem>>, %arg5: memref<16x32xf32, #tpu.memory_space<vmem>>) attributes {dimension_semantics = [#tpu.dimension_semantics<parallel>, #tpu.dimension_semantics<parallel>], iteration_bounds = array<i64: 1, 1>, scalar_prefetch = 0 : i64, scratch_operands = 0 : i64, tpu.core_type = #tpu.core_type<tc>, window_params = [{transform_indices = @transform_0, window_bounds = array<i64: 16, 32>}, {transform_indices = @transform_1, window_bounds = array<i64: 32, 32>}, {transform_indices = @transform_2, window_bounds = array<i64: 1, 32>}, {transform_indices = @transform_3, window_bounds = array<i64: 16, 32>}]} {
    %c0 = arith.constant 0 : index
    %c0_0 = arith.constant 0 : index
    %0 = vector.load %arg2[%c0, %c0_0] : memref<16x32xf32, #tpu.memory_space<vmem>>, vector<16x32xf32>
    %c0_1 = arith.constant 0 : index
    %c0_2 = arith.constant 0 : index
    %1 = vector.load %arg3[%c0_1, %c0_2] : memref<32x32xf32, #tpu.memory_space<vmem>>, vector<32x32xf32>
    %cst = arith.constant dense<0.000000e+00> : vector<16x32xf32>
    %2 = tpu.matmul %0, %1, %cst {dimension_numbers = #tpu.dot_dimension_numbers<[1], [1], [0], [0], [0, 0, 1, 0], [], []>} : vector<16x32xf32>, vector<32x32xf32>, vector<16x32xf32> -> vector<16x32xf32>
    %c0_3 = arith.constant 0 : index
    %c0_4 = arith.constant 0 : index
    %3 = vector.load %arg4[%c0_3, %c0_4] : memref<1x32xf32, #tpu.memory_space<vmem>>, vector<1x32xf32>
    %4 = vector.broadcast %3 : vector<1x32xf32> to vector<16x32xf32>
    %5 = arith.addf %2, %4 : vector<16x32xf32>
    %c0_5 = arith.constant 0 : index
    %c0_6 = arith.constant 0 : index
    %6 = vector.load %arg5[%c0_5, %c0_6] : memref<16x32xf32, #tpu.memory_space<vmem>>, vector<16x32xf32>
    tpu.vector_store %arg5[%c0_5, %c0_6], %5 {strides = array<i32>} : memref<16x32xf32, #tpu.memory_space<vmem>>, vector<16x32xf32>,
    return
  }
  func.func @transform_0(%arg0: i32, %arg1: i32) -> (i32, i32) {
    %c0_i32 = arith.constant 0 : i32
    %c0_i32_0 = arith.constant 0 : i32
    return %arg1, %c0_i32 : i32, i32
  }
  func.func @transform_1(%arg0: i32, %arg1: i32) -> (i32, i32) {
    %c0_i32 = arith.constant 0 : i32
    %c0_i32_0 = arith.constant 0 : i32
    return %arg0, %c0_i32 : i32, i32
  }
  func.func @transform_2(%arg0: i32, %arg1: i32) -> (i32, i32) {
    %c0_i32 = arith.constant 0 : i32
    %c0_i32_0 = arith.constant 0 : i32
    return %c0_i32, %arg0 : i32, i32
  }
  func.func @transform_3(%arg0: i32, %arg1: i32) -> (i32, i32) {
    %c0_i32 = arith.constant 0 : i32
    return %arg1, %arg0 : i32, i32
  }
}

</mosaic_0001>

<bundles_post_ra>
// kernel: multi_self_attention.5
= control target key start
LH: loop header
LB: loop body
LE: loop exit
PB: predicated region body
PF: predicated region fallthrough
CT: control target
= control target key end

     0   :  { %vm24_vm0 = vcmask 261120   ;;  %s142_s1 = inlined_call_operand.vmem [shape: f32[32,32], index: 1, kind: input, shape index: {}]   ;;  %s143_s2 = inlined_call_operand.vmem [shape: f32[1,32], index: 2, kind: input, shape index: {}]   ;;  %s144_s0 = inlined_call_operand.vmem [shape: f32[16,32], index: 0, kind: input, shape index: {}]   ;;  %s145_s3 = inlined_call_operand.vmem [shape: f32[16,32], index: 3, kind: output, shape index: {}]  }
   0x1   :  { %v19_v0 = vld [vmem:[%s142_s1 + $0x18] sm:$0xff]  ;;  %v18_v1 = vld [vmem:[%s142_s1 + $0x10] sm:$0xff]  ;;  %v17_v2 = vld [vmem:[%s142_s1 + $0x8] sm:$0xff] }
   0x2   :  { %72 = vmatpush.xpose.msk.msra.mxu0 %vm24_vm0, %v19_v0  ;;  %78 = vmatpush.xpose.msk.msra.mxu1 %vm24_vm0, %v19_v0  ;;  %v16_v3 = vld [vmem:[%s142_s1] sm:$0xff]  ;;  %v15_v5 = vld [vmem:[%s144_s0 + $0x8] sm:$0xff] }
   0x3   :  { %v14_v4 = vld [vmem:[%s144_s0] sm:$0xff] }
   0x4   :  { %v82_v6 = vld [vmem:[%s143_s2] ss:$0 sm:$0xff] }
   0x6   :  { %73 = vmatpush.xpose.msk.msra.mxu0 %vm24_vm0, %v18_v1  ;;  %79 = vmatpush.xpose.msk.msra.mxu1 %vm24_vm0, %v18_v1 }
   0xa   :  { %74 = vmatpush.xpose.msk.msra.mxu0 %vm24_vm0, %v17_v2  ;;  %80 = vmatpush.xpose.msk.msra.mxu1 %vm24_vm0, %v17_v2 }
   0xe   :  { %75 = vmatpush.xpose.msk.msra.mxu0 %vm24_vm0, %v16_v3  ;;  %81 = vmatpush.xpose.msk.msra.mxu1 %vm24_vm0, %v16_v3 }
  0x11   :  { %76 = vmatmul.msk.f32.vlgmr.msra.gmra.mxu0 %vm24_vm0, %v14_v4  ;;  %77 = vmatmul.msk.f32.vlgmr.msra.gmra.mxu1 %vm24_vm0, %v15_v5 }
  0x8e   :  { %v60_v7 = vpop.f32.mrf.mxu0  ;;  %v63_v8 = vpop.f32.mrf.mxu1 }
  0x8f   :  { %v61_v9 = vadd.f32 %v82_v6, %v60_v7  ;;  %v64_v10 = vadd.f32 %v82_v6, %v63_v8 }
  0x91   :  { %66 = vst.msk [vmem:[%s145_s3] sm:$0xff] %vm24_vm0, %v61_v9 }
  0x92   :  { %67 = vst.msk [vmem:[%s145_s3 + $0x8] sm:$0xff] %vm24_vm0, %v64_v10 }

// kernel: multi_self_attention.8
= control target key start
LH: loop header
LB: loop body
LE: loop exit
PB: predicated region body
PF: predicated region fallthrough
CT: control target
= control target key end

     0   :  { %s934_s12 = smov 0   ;;  %s936_s13 = smov 0   ;;  %s1067_s0 = inlined_call_operand.vmem [shape: f32[2,8,32], index: 0, kind: input, shape index: {}]   ;;  %s1068_s1 = inlined_call_operand.vmem [shape: f32[2,8,32], index: 1, kind: input, shape index: {}]   ;;  %s1069_s2 = inlined_call_operand.vmem [shape: f32[2,8,32], index: 2, kind: input, shape index: {}]   ;;  %s1070_s3 = inlined_call_operand.vmem [shape: f32[2,8,32], index: 3, kind: output, shape index: {}]  }
   0x1   :  { %s938_s14 = smov 0  }
   0x2 LB: > { %s32_s15 = sadd.s32 1, %s896_s13  ;;  %p793_p0 = scmp.ge.s32.totalorder %s900_s14, 1  ;;  %s900_s14 = sphi %s938_s14, %s13_s14   ;;  %s896_s13 = sphi %s936_s13, %s1072_s13   ;;  %s892_s12 = sphi %s934_s12, %s1071_s12  }
   0x3   : > { %p34_p1 = scmp.ge.s32.totalorder %s32_s15, 2  ;;  %p190_p2 = scmp.lt.s32.totalorder %s900_s14, 3 }
   0x5   : > { %s1074_s15 = smov (%p34_p1, %s32_s15), 0  ;;  %p191_p3 = pnand %p793_p0, %p190_p2 }
   0x6   : > { %p232_p4 = scmp.lt.s32.totalorder (!%p191_p3), %s892_s12, 1  ;;  %s903_s23 = smov (!%p191_p3), 112  }
   0x7   : > { %194 = sbr.rel (%p191_p3) target bundleno = 1084 (0x43c), region = 32  ;;  %s904_s24 = smov (!%p191_p3), 120  }
   0x8   : > { %s905_s25 = smov (!%p191_p3), 104   ;;  %s911_s29 = smov (!%p191_p3), 8  }
   0x9   : > { %s912_s30 = smov (!%p191_p3), 16   ;;  %s913_s4 = smov (!%p191_p3), 24  }
   0xc   : > { %s1076_s12 = smov (!%p232_p4, %s892_s12), 1  ;;  %vm272_vm0 = vcmask 64512   ;;  %vm264_vm1 = vcmask 31744   ;;  %v902_v2 = vmov -inf   ;;  %v906_v5 = vmov 0  }
   0xd   : > { %s952_s16 = sshll.u32 %s1076_s12, 3  ;;  %265 = vst.msk [vmem:[#allocation2] sm:$0xff] %vm264_vm1, %v902_v2  ;;  %848 = vset.pattern.permute.xlu1 %v906_v5  ;;  %v907_v6 = vmov 0.0   ;;  %vm321_vm2 = vcmask 7168   ;;  %v908_v29 = vmov 1   ;;  %v909_v30 = vmov 2  }
   0xe   : > { %s245_s19 = scalar_lea.vmem %s1068_s1, %s952_s16  ;;  %s238_s22 = scalar_lea.vmem %s1067_s0, %s952_s16  ;;  %266 = vst.msk [vmem:[#allocation3] sm:$0xff] %vm264_vm1, %v907_v6  ;;  %849 = vset.pattern.permute.xlu2 %v908_v29  ;;  %850 = vset.pattern.permute.xlu0 %v909_v30  ;;  %v910_v31 = vmov 3   ;;  %vm406_vm3 = vcmask 15368   ;;  %vm500_vm4 = vcmask 23568   ;;  %vm593_vm5 = vcmask 31768  }
   0xf   : > { %v270_v0 = vld [vmem:[%s245_s19] sm:$0xff]  ;;  %s252_s28 = scalar_lea.vmem %s1069_s2, %s952_s16  ;;  %vm267_vm6 = vcmask 261120   ;;  %vm447_vm7 = vcmask 130112   ;;  %vm540_vm8 = vcmask 195712   ;;  %vm633_vm9 = vcmask 261312   ;;  %s259_s7 = scalar_lea.vmem %s1070_s3, %s952_s16 }
  0x10   : > { %798 = vmatpush.xpose.msk.msra.mxu0 %vm272_vm0, %v270_v0  ;;  %v269_v1 = vld [vmem:[%s238_s22] sm:$0xff]  ;;  %452 = vrot.lane.b32.xlu2 %v270_v0, %s903_s23  ;;  %268 = vst.msk [vmem:[#allocation4] sm:$0xff] %vm267_vm6, %v907_v6 }
  0x11   : > { %v271_v12 = vld [vmem:[%s252_s28] sm:$0xff] }
  0x12   : > { %341 = vmatpush.msra.mxu1 %v271_v12 }
  0x13   : > { %799 = vmatmul.msk.f32.vlgmr.msra.gmra.mxu0 %vm272_vm0, %v269_v1 }
  0x14   : > { %v973_v7 = vld [vmem:[#allocation2] sm:$0xff] }
  0x17   : > { %v346_v55 = vld [vmem:[#allocation4] sm:$0xff] }
  0x18   : > { %450 = vrot.lane.b32.xlu2 %v269_v1, %s903_s23 }
  0x20   : > { %543 = vrot.lane.b32.xlu2 %v269_v1, %s905_s25 }
  0x6a   : > { %v453_v13 = vpop.permute.xlu2 %452 }
  0x6b   : > { %804 = vmatpush.xpose.msk.msrb.mxu1 %vm272_vm0, %v453_v13 }
  0x72   : > { %v451_v18 = vpop.permute.xlu2 %450 }
  0x7a   : > { %v544_v21 = vpop.permute.xlu2 %543 }
  0x90   : > { %v296_v3 = vpop.f32.mrf.mxu0 }
  0x91   : > { %v300_v4 = vsel %vm272_vm0, %v296_v3, -inf }
  0x92   : > { %301 = vmax.xlane.f32.xlu0 %v300_v4 }
  0xa6   : > { %358 = vrot.lane.b32.xlu0 %v270_v0, %s904_s24 }
 0x105   : > { %v302_v8 = vpop.xlane.xlu0 %301 }
 0x106   : > { %v303_v9 = vmax.f32 %v973_v7, %v302_v8 }
 0x108   : > { %v304_v10 = vsub.f32 %v973_v7, %v303_v9  ;;  %355 = vst.msk [vmem:[#allocation2] sm:$0xff] %vm321_vm2, %v303_v9  ;;  %309 = vperm.xlu1 %848, %v303_v9  }
 0x10a   : > { %v305_v40 = vmul.f32 1.442695, %v304_v10  ;;  %v315_v10 = vld [vmem:[#allocation3] sm:$0xff] }
 0x10f   : > { %v1005_v32 = vld [vmem:[#allocation2] sm:$0xff] }
 0x110   : > { %356 = vrot.lane.b32.xlu1 %v269_v1, %s904_s24 }
 0x111   : > { %851 = vset.pattern.permute.xlu1 %v910_v31 }
 0x118   : > { %545 = vrot.lane.b32.xlu1 %v270_v0, %s905_s25  ;;  %v359_v11 = vpop.permute.xlu0 %358 }
 0x119   : > { %801 = vmatpush.xpose.msk.msra.mxu2 %vm272_vm0, %v359_v11 }
 0x17a   : > { %v310_v14 = vpop.permute.xlu1 %309 }
 0x17b   : > { %v312_v15 = vsub.f32 %v296_v3, %v310_v14 }
 0x17d   : > { %v313_v16 = vmul.f32 1.442695, %v312_v15 }
 0x17f   : > { %860 = vpow2.f32 %v313_v16 }
 0x180   : > { %862 = vpow2.f32 %v305_v40 }
 0x182   : > { %v357_v17 = vpop.permute.xlu1 %356 }
 0x183   : > { %802 = vmatmul.msk.f32.vlgmr.msra.gmra.mxu2 %vm272_vm0, %v357_v17 }
 0x185   : > { %v861_v19 = vpop.eup %860 }
 0x186   : > { %800 = vmatmul.msk.f32.vlgmr.msra.gmra.mxu1 %vm272_vm0, %v861_v19  ;;  %v863_v45 = vpop.eup %862  ;;  %v317_v46 = vsel %vm272_vm0, %v861_v19, 0.0 }
 0x187   : > { %v316_v11 = vmul.f32 %v863_v45, %v315_v10 }
 0x18a   : > { %v546_v20 = vpop.permute.xlu1 %545 }
 0x18b   : > { %807 = vmatpush.xpose.msk.msrb.mxu0 %vm272_vm0, %v546_v20 }
 0x18e   : > { %805 = vmatmul.msk.f32.vlgmr.msrb.gmra.mxu1 %vm272_vm0, %v451_v18  ;;  %808 = vmatmul.msk.f32.vlgmr.msrb.gmra.mxu0 %vm272_vm0, %v544_v21 }
 0x203   : > { %v991_v22 = vpop.f32.mrf.mxu1 }
 0x206   : > { %v381_v23 = vpop.f32.mrf.mxu2 }
 0x207   : > { %v385_v24 = vsel %vm272_vm0, %v381_v23, -inf }
 0x208   : > { %386 = vmax.xlane.f32.xlu1 %v385_v24 }
 0x20b   : > { %v994_v25 = vpop.f32.mrf.mxu1  ;;  %v996_v26 = vpop.f32.mrf.mxu0 }
 0x20c   : > { %v479_v27 = vsel %vm272_vm0, %v994_v25, -inf  ;;  %v572_v28 = vsel %vm272_vm0, %v996_v26, -inf }
 0x20d   : > { %480 = vmax.xlane.f32.xlu2 %v479_v27  ;;  %573 = vmax.xlane.f32.xlu0 %v572_v28 }
 0x221   : > { %409 = vrot.lane.b32.xlu1 %v271_v12, %s904_s24 }
 0x27b   : > { %v387_v33 = vpop.xlane.xlu1 %386 }
 0x27c   : > { %v1008_v34 = vmax.f32 %v1005_v32, %v387_v33 }
 0x27e   : > { %v389_v35 = vsub.f32 %v1005_v32, %v1008_v34  ;;  %449 = vst.msk [vmem:[#allocation2] sm:$0xff] %vm406_vm3, %v1008_v34  ;;  %394 = vperm.xlu2 %849, %v1008_v34  }
 0x280   : > { %v481_v36 = vpop.xlane.xlu2 %480  ;;  %v574_v41 = vpop.xlane.xlu0 %573  ;;  %v390_v7 = vmul.f32 1.442695, %v389_v35 }
 0x285   : > { %v478_v37 = vld [vmem:[#allocation2] sm:$0xff] }
 0x286   : > { %v482_v38 = vmax.f32 %v478_v37, %v481_v36  ;;  %502 = vrot.lane.b32.xlu2 %v271_v12, %s903_s23 }
 0x287   : > { %852 = vset.pattern.permute.xlu2 %v906_v5 }
 0x288   : > { %v483_v39 = vsub.f32 %v478_v37, %v482_v38  ;;  %542 = vst.msk [vmem:[#allocation2] sm:$0xff] %vm500_vm4, %v482_v38  ;;  %488 = vperm.xlu0 %850, %v482_v38  }
 0x28e   : > { %595 = vrot.lane.b32.xlu2 %v271_v12, %s905_s25 }
 0x28f   : > { %v571_v42 = vld [vmem:[#allocation2] sm:$0xff] }
 0x290   : > { %v575_v43 = vmax.f32 %v571_v42, %v574_v41  ;;  %856 = vset.pattern.permute.xlu0 %v906_v5  ;;  %v484_v5 = vmul.f32 1.442695, %v483_v39 }
 0x292   : > { %v576_v44 = vsub.f32 %v571_v42, %v575_v43  ;;  %635 = vst.msk [vmem:[#allocation2] sm:$0xff] %vm593_vm5, %v575_v43  ;;  %581 = vperm.xlu1 %851, %v575_v43  }
 0x293   : > { %v410_v47 = vpop.permute.xlu1 %409 }
 0x294   : > { %430 = vmatpush.msra.mxu3 %v410_v47  ;;  %v577_v8 = vmul.f32 1.442695, %v576_v44 }
 0x296   : > { %349 = vperm.xlu2 %852, %v863_v45  }
 0x29a   : > { %853 = vset.pattern.permute.xlu1 %v908_v29 }
 0x29e   : > { %854 = vset.pattern.permute.xlu2 %v909_v30 }
 0x2bc   : > { %318 = vadd.xlane.f32.xlu1 %v317_v46 }
 0x2d8   : > { %v395_v48 = vpop.permute.xlu2 %394 }
 0x2d9   : > { %v397_v49 = vsub.f32 %v381_v23, %v395_v48 }
 0x2db   : > { %v398_v50 = vmul.f32 1.442695, %v397_v49 }
 0x2dd   : > { %864 = vpow2.f32 %v398_v50 }
 0x2e0   : > { %v503_v51 = vpop.permute.xlu2 %502 }
 0x2e1   : > { %523 = vmatpush.msrb.mxu3 %v503_v51 }
 0x2e3   : > { %v865_v52 = vpop.eup %864 }
 0x2e4   : > { %803 = vmatmul.msk.f32.vlgmr.msra.gmra.mxu3 %vm272_vm0, %v865_v52  ;;  %v402_v53 = vsel %vm272_vm0, %v865_v52, 0.0 }
 0x2e5   : > { %403 = vadd.xlane.f32.xlu0 %v402_v53 }
 0x2e8   : > { %v596_v54 = vpop.permute.xlu2 %595 }
 0x2e9   : > { %616 = vmatpush.msrb.mxu2 %v596_v54 }
 0x2f0   : > { %v350_v56 = vpop.permute.xlu2 %349 }
 0x2f1   : > { %v352_v57 = vmul.f32 %v350_v56, %v346_v55 }
 0x2f3   : > { %v353_v58 = vadd.f32 %v352_v57, %v991_v22 }
 0x2f5   : > { %354 = vst.msk [vmem:[#allocation4] sm:$0xff] %vm272_vm0, %v353_v58 }
 0x2fa   : > { %v489_v59 = vpop.permute.xlu0 %488 }
 0x2fb   : > { %v491_v60 = vsub.f32 %v994_v25, %v489_v59 }
 0x2fc   : > { %v435_v34 = vld [vmem:[#allocation4] sm:$0xff] }
 0x2fd   : > { %v492_v61 = vmul.f32 1.442695, %v491_v60 }
 0x2ff   : > { %866 = vpow2.f32 %v492_v61 }
 0x304   : > { %v582_v62 = vpop.permute.xlu1 %581 }
 0x305   : > { %v867_v63 = vpop.eup %866  ;;  %v584_v0 = vsub.f32 %v996_v26, %v582_v62 }
 0x306   : > { %806 = vmatmul.msk.f32.vlgmr.msrb.gmra.mxu3 %vm272_vm0, %v867_v63  ;;  %v496_v1 = vsel %vm272_vm0, %v867_v63, 0.0 }
 0x307   : > { %v585_v2 = vmul.f32 1.442695, %v584_v0  ;;  %497 = vadd.xlane.f32.xlu2 %v496_v1 }
 0x309   : > { %868 = vpow2.f32 %v585_v2 }
 0x30a   : > { %870 = vpow2.f32 %v484_v5 }
 0x30b   : > { %872 = vpow2.f32 %v390_v7 }
 0x30c   : > { %874 = vpow2.f32 %v577_v8 }
 0x30f   : > { %v869_v3 = vpop.eup %868 }
 0x310   : > { %809 = vmatmul.msk.f32.vlgmr.msrb.gmra.mxu2 %vm272_vm0, %v869_v3  ;;  %v589_v4 = vsel %vm272_vm0, %v869_v3, 0.0  ;;  %v871_v6 = vpop.eup %870 }
 0x311   : > { %590 = vadd.xlane.f32.xlu1 %v589_v4  ;;  %v873_v9 = vpop.eup %872 }
 0x312   : > { %v875_v14 = vpop.eup %874 }
 0x31f   : > { %531 = vperm.xlu2 %854, %v871_v6  }
 0x32a   : > { %438 = vperm.xlu1 %853, %v873_v9  }
 0x32f   : > { %v319_v12 = vpop.xlane.xlu1 %318 }
 0x330   : > { %v320_v13 = vadd.f32 %v319_v12, %v316_v11 }
 0x332   : > { %322 = vst.msk [vmem:[#allocation3] sm:$0xff] %vm321_vm2, %v320_v13  ;;  %855 = vset.pattern.permute.xlu1 %v910_v31 }
 0x333   : > { %624 = vperm.xlu1 %855, %v875_v14  }
 0x339   : > { %v400_v15 = vld [vmem:[#allocation3] sm:$0xff] }
 0x33a   : > { %v401_v16 = vmul.f32 %v873_v9, %v400_v15 }
 0x33b   : > { %857 = vset.pattern.permute.xlu1 %v908_v29 }
 0x358   : > { %v404_v17 = vpop.xlane.xlu0 %403 }
 0x359   : > { %v405_v18 = vadd.f32 %v404_v17, %v401_v16 }
 0x35b   : > { %407 = vst.msk [vmem:[#allocation3] sm:$0xff] %vm406_vm3, %v405_v18 }
 0x362   : > { %v494_v20 = vld [vmem:[#allocation3] sm:$0xff] }
 0x363   : > { %v495_v21 = vmul.f32 %v871_v6, %v494_v20 }
 0x367   : > { %v432_v19 = vpop.f32.mrf.mxu3 }
 0x368   : > { %443 = vrot.lane.b32.xlu0 %v432_v19, %s911_s29 }
 0x37a   : > { %v498_v22 = vpop.xlane.xlu2 %497 }
 0x37b   : > { %v499_v23 = vadd.f32 %v498_v22, %v495_v21 }
 0x37d   : > { %501 = vst.msk [vmem:[#allocation3] sm:$0xff] %vm500_vm4, %v499_v23 }
 0x382   : > { %v532_v39 = vpop.permute.xlu2 %531 }
 0x384   : > { %v587_v24 = vld [vmem:[#allocation3] sm:$0xff]  ;;  %v591_v26 = vpop.xlane.xlu1 %590 }
 0x385   : > { %v588_v25 = vmul.f32 %v875_v14, %v587_v24 }
 0x387   : > { %v592_v27 = vadd.f32 %v591_v26, %v588_v25 }
 0x389   : > { %594 = vst.msk [vmem:[#allocation3] sm:$0xff] %vm593_vm5, %v592_v27  ;;  %v525_v28 = vpop.f32.mrf.mxu3 }
 0x38a   : > { %536 = vrot.lane.b32.xlu0 %v525_v28, %s912_s30 }
 0x390   : > { %v649_v29 = vld [vmem:[#allocation3] sm:$0xff] }
 0x391   : > { %876 = vrcp.f32 %v649_v29 }
 0x393   : > { %v618_v30 = vpop.f32.mrf.mxu2 }
 0x394   : > { %629 = vrot.lane.b32.xlu2 %v618_v30, %s913_s4 }
 0x397   : > { %v877_v32 = vpop.eup %876 }
 0x398   : > { %654 = vperm.xlu1 %857, %v877_v32   ;;  %644 = vperm.xlu0 %856, %v877_v32  }
 0x39c   : > { %664 = vperm.xlu2 %854, %v877_v32   ;;  %v439_v33 = vpop.permute.xlu1 %438 }
 0x39d   : > { %v441_v35 = vmul.f32 %v439_v33, %v435_v34 }
 0x3a0   : > { %858 = vset.pattern.permute.xlu1 %v910_v31  ;;  %859 = vset.pattern.permute.xlu0 %v910_v31 }
 0x3a1   : > { %674 = vperm.xlu1 %858, %v877_v32  }
 0x3a5   : > { %v625_v43 = vpop.permute.xlu1 %624 }
 0x3da   : > { %v444_v36 = vpop.permute.xlu0 %443 }
 0x3db   : > { %v446_v37 = vadd.f32 %v444_v36, %v441_v35 }
 0x3dd   : > { %448 = vst.msk [vmem:[#allocation4] sm:$0xff] %vm447_vm7, %v446_v37 }
 0x3e4   : > { %v528_v38 = vld [vmem:[#allocation4] sm:$0xff] }
 0x3e5   : > { %v534_v40 = vmul.f32 %v532_v39, %v528_v38 }
 0x3ee   : > { %v630_v45 = vpop.permute.xlu2 %629 }
 0x3f6   : > { %v665_v53 = vpop.permute.xlu2 %664 }
 0x3fc   : > { %v537_v41 = vpop.permute.xlu0 %536 }
 0x3fd   : > { %v539_v42 = vadd.f32 %v537_v41, %v534_v40 }
 0x3ff   : > { %541 = vst.msk [vmem:[#allocation4] sm:$0xff] %vm540_vm8, %v539_v42 }
 0x406   : > { %v621_v44 = vld [vmem:[#allocation4] sm:$0xff] }
 0x407   : > { %v627_v31 = vmul.f32 %v625_v43, %v621_v44 }
 0x409   : > { %v632_v46 = vadd.f32 %v630_v45, %v627_v31 }
 0x40a   : > { %v645_v48 = vpop.permute.xlu0 %644  ;;  %v655_v50 = vpop.permute.xlu1 %654 }
 0x40b   : > { %634 = vst.msk [vmem:[#allocation4] sm:$0xff] %vm633_vm9, %v632_v46 }
 0x412   : > { %v641_v47 = vld [vmem:[#allocation4] sm:$0xff] }
 0x413   : > { %v647_v49 = vmul.f32 %v645_v48, %v641_v47  ;;  %v675_v56 = vpop.permute.xlu1 %674 }
 0x415   : > { %648 = vst.msk [vmem:[#allocation4] sm:$0xff] %vm272_vm0, %v647_v49 }
 0x41c   : > { %v651_v51 = vld [vmem:[#allocation4] sm:$0xff] }
 0x41d   : > { %v657_v52 = vmul.f32 %v655_v50, %v651_v51 }
 0x41f   : > { %658 = vst.msk [vmem:[#allocation4] sm:$0xff] %vm447_vm7, %v657_v52 }
 0x426   : > { %v661_v54 = vld [vmem:[#allocation4] sm:$0xff] }
 0x427   : > { %v667_v55 = vmul.f32 %v665_v53, %v661_v54 }
 0x429   : > { %668 = vst.msk [vmem:[#allocation4] sm:$0xff] %vm540_vm8, %v667_v55 }
 0x430   : > { %v671_v57 = vld [vmem:[#allocation4] sm:$0xff] }
 0x431   : > { %v677_v58 = vmul.f32 %v675_v56, %v671_v57 }
 0x433   : > { %678 = vst.msk [vmem:[#allocation4] sm:$0xff] %vm633_vm9, %v677_v58 }
 0x43a   : > { %v679_v59 = vld [vmem:[#allocation4] sm:$0xff] }
 0x43b   : > { %681 = vst.msk [vmem:[%s259_s7] sm:$0xff] %vm267_vm6, %v679_v59 }
 0x43c PF: > { %s13_s14 = sadd.s32 1, %s900_s14   ;;  %s1071_s12 = smov %s896_s13 }
 0x43d   : > { %p10_p5 = scmp.ge.s32.totalorder %s13_s14, 4   ;;  %s1072_s13 = smov %s1074_s15 }
 0x43f   :  { %12 = sbr.rel (!%p10_p5) target bundleno = 2 (0x2), region = 76 }

</bundles_post_ra>
